<compile_context>
chip_gen: v5e
topology: v5e:2x2
jax: 0.10.0
libtpu: 0.0.40
codegen_flags: <defaults>
</compile_context>

<pallas_src>
import functools

import jax
import jax.numpy as jnp
from jax import lax
from jax.experimental import pallas as pl
from jax.experimental.pallas import tpu as pltpu


def _round_up(x, m):
    return ((x + m - 1) // m) * m


def _conv1d_kernel(x_ref, w_ref, b_ref, o_ref, *, T_tile, K):
    """One (c_out-tile, batch, time-tile) grid step.

    x_ref : (1, 1, T_tile + H, C_in_p)  bf16 (includes K-1 halo rows)
    w_ref : (K, C_in_p, c_tile)         bf16
    b_ref : (1, c_tile)                 f32
    o_ref : (1, T_tile, c_tile)         out dtype
    """
    c_tile = o_ref.shape[-1]
    # Start the accumulator as the broadcast bias -> no separate "+ bias" pass.
    acc = jnp.broadcast_to(b_ref[...], (T_tile, c_tile)).astype(jnp.float32)
    for k in range(K):  # K is a small static Python int -> unrolled
        acc = acc + jnp.dot(x_ref[0, 0, k:k + T_tile, :], w_ref[k],
                            preferred_element_type=jnp.float32)
    o_ref[0] = acc.astype(o_ref.dtype)


def conv1d_same_reflect(x, weight, bias, *, kernel_size, dilation=1, stride=1,
                        t_tile=256, c_tile_max=512):
    """x: (B, T, C_in). weight: (C_out, C_in, K) torch layout. bias: (C_out,)."""
    assert stride == 1 and dilation == 1, "only the module defaults are implemented"
    B, T, C_in = x.shape
    C_out, C_in_w, K = weight.shape
    assert C_in_w == C_in and K == kernel_size
    assert K % 2 == 1, "kernel size must be odd (the module enforces this)"
    P = (K - 1) // 2
    assert T > P, "reflect padding requires T > (K-1)//2"
    assert c_tile_max >= 128

    out_dtype = x.dtype

    # ---------------- tiling choices ----------------
    T_tile = min(int(t_tile), _round_up(T, 8))         # sublane-aligned time tile
    n_t = (T + T_tile - 1) // T_tile
    H = max(8, _round_up(K - 1, 8))                     # halo rows, 8-aligned
    T_win = T_tile + H                                  # overlapping input window
    C_in_p = _round_up(C_in, 128)                       # lane-dense channels
    C_out_p = _round_up(C_out, 128)
    cap = min(c_tile_max, 512)
    if C_out_p <= cap:
        c_tile = C_out_p
    else:
        c_tile = max(c for c in (512, 384, 256, 128) if c <= cap and C_out_p % c == 0)
    n_c = C_out_p // c_tile

    # ---------------- layout prep (bf16 inputs, f32 accumulate) ----------------
    L_full = n_t * T_tile + H
    x_b = x.astype(jnp.bfloat16)
    x_rp = jnp.pad(x_b, ((0, 0), (P, P), (0, 0)), mode="reflect")   # (B, T+K-1, C_in)
    x_full = jnp.pad(
        x_rp, ((0, 0), (0, L_full - (T + K - 1)), (0, C_in_p - C_in)))
    # Per-tile overlapping windows (only ~H/T_tile extra bytes duplicated).
    win_idx = (jnp.arange(n_t, dtype=jnp.int32)[:, None] * T_tile
               + jnp.arange(T_win, dtype=jnp.int32)[None, :]).reshape(-1)
    x_win = jnp.take(x_full, win_idx, axis=1).reshape(B, n_t, T_win, C_in_p)

    # weight (C_out, C_in, K) -> (K, C_in_p, C_out_p), bf16
    w_t = jnp.transpose(weight, (2, 1, 0)).astype(jnp.bfloat16)
    w_t = jnp.pad(w_t, ((0, 0), (0, C_in_p - C_in), (0, C_out_p - C_out)))
    b_t = jnp.pad(bias.astype(jnp.float32), (0, C_out_p - C_out)).reshape(1, C_out_p)

    kernel = functools.partial(_conv1d_kernel, T_tile=T_tile, K=K)

    out = pl.pallas_call(
        kernel,
        out_shape=jax.ShapeDtypeStruct((B, n_t * T_tile, C_out_p), out_dtype),
        grid_spec=pltpu.PrefetchScalarGridSpec(
            num_scalar_prefetch=0,
            # c outermost: weight block index is unchanged across (b, t) steps,
            # so it stays resident; x tiles stream through the auto-pipeline.
            grid=(n_c, B, n_t),
            in_specs=[
                pl.BlockSpec((1, 1, T_win, C_in_p), lambda c, b, t: (b, t, 0, 0)),
                pl.BlockSpec((K, C_in_p, c_tile), lambda c, b, t: (0, 0, c)),
                pl.BlockSpec((1, c_tile), lambda c, b, t: (0, c)),
            ],
            out_specs=pl.BlockSpec((1, T_tile, c_tile), lambda c, b, t: (b, t, c)),
        ),
        compiler_params=pltpu.CompilerParams(
            dimension_semantics=("parallel", "parallel", "parallel"),
            vmem_limit_bytes=32 * 1024 * 1024,
        ),
    )(x_win, w_t, b_t)

    # Trim zero-padded time rows / output channels.
    return out[:, :T, :C_out]


def reference_conv1d(x, weight, bias, kernel_size):
    """Pure-JAX reference on the same bf16-rounded inputs, f32 accumulation."""
    K = kernel_size
    P = (K - 1) // 2
    B, T, _ = x.shape
    C_out = weight.shape[0]
    xb = x.astype(jnp.bfloat16).astype(jnp.float32)
    wb = jnp.transpose(weight, (2, 1, 0)).astype(jnp.bfloat16).astype(jnp.float32)
    xp = jnp.pad(xb, ((0, 0), (P, P), (0, 0)), mode="reflect")
    acc = jnp.zeros((B, T, C_out), jnp.float32) + bias.astype(jnp.float32)
    for k in range(K):
        acc = acc + jnp.einsum("btc,co->bto", xp[:, k:k + T, :], wb[k],
                               precision=lax.Precision.HIGHEST)
    return acc.astype(x.dtype)


if __name__ == "__main__":
    key = jax.random.PRNGKey(0)

    # --- test 1: tiny config consistent with the module (x is (B, T, C)) ----
    B, T, C_in, C_out, K = 2, 16, 8, 16, 3
    kx, kw, kb, key = jax.random.split(key, 4)
    x = jax.random.normal(kx, (B, T, C_in), dtype=jnp.float32)
    weight = jax.random.normal(kw, (C_out, C_in, K), dtype=jnp.float32) * 0.1
    bias = jax.random.normal(kb, (C_out,), dtype=jnp.float32) * 0.1
    out = jax.block_until_ready(conv1d_same_reflect(x, weight, bias, kernel_size=K))
    ref = reference_conv1d(x, weight, bias, K)
    assert out.shape == (B, T, C_out)
    assert jnp.allclose(out, ref, atol=1e-3, rtol=1e-3), "test1 mismatch vs reference"

    # --- test 2: exercises multi-tile time (with halo across tiles), channel
    #             padding, C_out tiling (n_c > 1) and output trimming ---------
    B, T, C_in, C_out, K = 1, 37, 5, 200, 5
    kx, kw, kb, key = jax.random.split(key, 4)
    x = jax.random.normal(kx, (B, T, C_in), dtype=jnp.float32)
    weight = jax.random.normal(kw, (C_out, C_in, K), dtype=jnp.float32) * 0.1
    bias = jax.random.normal(kb, (C_out,), dtype=jnp.float32) * 0.1
    out = jax.block_until_ready(
        conv1d_same_reflect(x, weight, bias, kernel_size=K, t_tile=16, c_tile_max=128))
    ref = reference_conv1d(x, weight, bias, K)
    assert out.shape == (B, T, C_out)
    assert jnp.allclose(out, ref, atol=1e-3, rtol=1e-3), "test2 mismatch vs reference"

    print("KERNEL_OK")
</pallas_src>

<mosaic_0001>
module attributes {stable_mosaic.version = 11 : i64} {
  func.func @_conv1d_kernel(%arg0: i32, %arg1: i32, %arg2: i32, %arg3: memref<1x1x24x128xbf16, #tpu.memory_space<vmem>>, %arg4: memref<3x128x128xbf16, #tpu.memory_space<vmem>>, %arg5: memref<1x128xf32, #tpu.memory_space<vmem>>, %arg6: memref<1x16x128xf32, #tpu.memory_space<vmem>>) attributes {dimension_semantics = [#tpu.dimension_semantics<parallel>, #tpu.dimension_semantics<parallel>, #tpu.dimension_semantics<parallel>], iteration_bounds = array<i64: 1, 2, 1>, scalar_prefetch = 0 : i64, scratch_operands = 0 : i64, tpu.core_type = #tpu.core_type<tc>, window_params = [{transform_indices = @transform_0, window_bounds = array<i64: 1, 1, 24, 128>}, {transform_indices = @transform_1, window_bounds = array<i64: 3, 128, 128>}, {transform_indices = @transform_2, window_bounds = array<i64: 1, 128>}, {transform_indices = @transform_3, window_bounds = array<i64: 1, 16, 128>}]} {
    %c0 = arith.constant 0 : index
    %c0_0 = arith.constant 0 : index
    %0 = vector.load %arg5[%c0, %c0_0] : memref<1x128xf32, #tpu.memory_space<vmem>>, vector<1x128xf32>
    %1 = vector.shape_cast %0 : vector<1x128xf32> to vector<1x128xf32>
    %2 = vector.broadcast %1 : vector<1x128xf32> to vector<16x128xf32>
    %c0_1 = arith.constant 0 : index
    %c0_2 = arith.constant 0 : index
    %c0_3 = arith.constant 0 : index
    %c0_4 = arith.constant 0 : index
    %3 = vector.load %arg3[%c0_1, %c0_2, %c0_3, %c0_4] : memref<1x1x24x128xbf16, #tpu.memory_space<vmem>>, vector<1x1x16x128xbf16>
    %4 = vector.shape_cast %3 : vector<1x1x16x128xbf16> to vector<16x128xbf16>
    %c0_5 = arith.constant 0 : index
    %c0_6 = arith.constant 0 : index
    %c0_7 = arith.constant 0 : index
    %5 = vector.load %arg4[%c0_5, %c0_6, %c0_7] : memref<3x128x128xbf16, #tpu.memory_space<vmem>>, vector<1x128x128xbf16>
    %6 = vector.shape_cast %5 : vector<1x128x128xbf16> to vector<128x128xbf16>
    %cst = arith.constant dense<0.000000e+00> : vector<16x128xf32>
    %7 = tpu.matmul %4, %6, %cst {dimension_numbers = #tpu.dot_dimension_numbers<[1], [0], [0], [1], [0, 0, 1, 1], [], []>} : vector<16x128xbf16>, vector<128x128xbf16>, vector<16x128xf32> -> vector<16x128xf32>
    %8 = arith.addf %2, %7 : vector<16x128xf32>
    %c0_8 = arith.constant 0 : index
    %c0_9 = arith.constant 0 : index
    %c1 = arith.constant 1 : index
    %c0_10 = arith.constant 0 : index
    %9 = vector.load %arg3[%c0_8, %c0_9, %c1, %c0_10] : memref<1x1x24x128xbf16, #tpu.memory_space<vmem>>, vector<1x1x16x128xbf16>
    %10 = vector.shape_cast %9 : vector<1x1x16x128xbf16> to vector<16x128xbf16>
    %c1_11 = arith.constant 1 : index
    %c0_12 = arith.constant 0 : index
    %c0_13 = arith.constant 0 : index
    %11 = vector.load %arg4[%c1_11, %c0_12, %c0_13] : memref<3x128x128xbf16, #tpu.memory_space<vmem>>, vector<1x128x128xbf16>
    %12 = vector.shape_cast %11 : vector<1x128x128xbf16> to vector<128x128xbf16>
    %cst_14 = arith.constant dense<0.000000e+00> : vector<16x128xf32>
    %13 = tpu.matmul %10, %12, %cst_14 {dimension_numbers = #tpu.dot_dimension_numbers<[1], [0], [0], [1], [0, 0, 1, 1], [], []>} : vector<16x128xbf16>, vector<128x128xbf16>, vector<16x128xf32> -> vector<16x128xf32>
    %14 = arith.addf %8, %13 : vector<16x128xf32>
    %c0_15 = arith.constant 0 : index
    %c0_16 = arith.constant 0 : index
    %c2 = arith.constant 2 : index
    %c0_17 = arith.constant 0 : index
    %15 = vector.load %arg3[%c0_15, %c0_16, %c2, %c0_17] : memref<1x1x24x128xbf16, #tpu.memory_space<vmem>>, vector<1x1x16x128xbf16>
    %16 = vector.shape_cast %15 : vector<1x1x16x128xbf16> to vector<16x128xbf16>
    %c2_18 = arith.constant 2 : index
    %c0_19 = arith.constant 0 : index
    %c0_20 = arith.constant 0 : index
    %17 = vector.load %arg4[%c2_18, %c0_19, %c0_20] : memref<3x128x128xbf16, #tpu.memory_space<vmem>>, vector<1x128x128xbf16>
    %18 = vector.shape_cast %17 : vector<1x128x128xbf16> to vector<128x128xbf16>
    %cst_21 = arith.constant dense<0.000000e+00> : vector<16x128xf32>
    %19 = tpu.matmul %16, %18, %cst_21 {dimension_numbers = #tpu.dot_dimension_numbers<[1], [0], [0], [1], [0, 0, 1, 1], [], []>} : vector<16x128xbf16>, vector<128x128xbf16>, vector<16x128xf32> -> vector<16x128xf32>
    %20 = arith.addf %14, %19 : vector<16x128xf32>
    %c0_22 = arith.constant 0 : index
    %c0_23 = arith.constant 0 : index
    %c0_24 = arith.constant 0 : index
    %21 = vector.load %arg6[%c0_22, %c0_23, %c0_24] : memref<1x16x128xf32, #tpu.memory_space<vmem>>, vector<1x16x128xf32>
    %22 = vector.shape_cast %21 : vector<1x16x128xf32> to vector<16x128xf32>
    %23 = vector.shape_cast %20 : vector<16x128xf32> to vector<1x16x128xf32>
    tpu.vector_store %arg6[%c0_22, %c0_23, %c0_24], %23 {strides = array<i32>} : memref<1x16x128xf32, #tpu.memory_space<vmem>>, vector<1x16x128xf32>,
    return
  }
  func.func @transform_0(%arg0: i32, %arg1: i32, %arg2: i32) -> (i32, i32, i32, i32) {
    %c0_i32 = arith.constant 0 : i32
    %c0_i32_0 = arith.constant 0 : i32
    %c0_i32_1 = arith.constant 0 : i32
    return %arg1, %arg2, %c0_i32, %c0_i32_0 : i32, i32, i32, i32
  }
  func.func @transform_1(%arg0: i32, %arg1: i32, %arg2: i32) -> (i32, i32, i32) {
    %c0_i32 = arith.constant 0 : i32
    %c0_i32_0 = arith.constant 0 : i32
    %c0_i32_1 = arith.constant 0 : i32
    return %c0_i32, %c0_i32_0, %arg0 : i32, i32, i32
  }
  func.func @transform_2(%arg0: i32, %arg1: i32, %arg2: i32) -> (i32, i32) {
    %c0_i32 = arith.constant 0 : i32
    %c0_i32_0 = arith.constant 0 : i32
    return %c0_i32, %arg0 : i32, i32
  }
  func.func @transform_3(%arg0: i32, %arg1: i32, %arg2: i32) -> (i32, i32, i32) {
    %c0_i32 = arith.constant 0 : i32
    return %arg1, %arg2, %arg0 : i32, i32, i32
  }
}

</mosaic_0001>

<bundles_post_ra>
// kernel: tpu_custom_call.1
= control target key start
LH: loop header
LB: loop body
LE: loop exit
PB: predicated region body
PF: predicated region fallthrough
CT: control target
= control target key end

     0   :  { %8 = vsyncpa [#allocation3], 0  ;;  %s1243_s0 = inlined_call_operand.hbm [shape: bf16[2,1,24,128], index: 0, kind: input, shape index: {}]   ;;  %s1244_s1 = inlined_call_operand.hbm [shape: bf16[3,128,128], index: 1, kind: input, shape index: {}]   ;;  %s1245_s2 = inlined_call_operand.vmem [shape: f32[1,128], index: 2, kind: input, shape index: {}]   ;;  %s1246_s3 = inlined_call_operand.hbm [shape: f32[2,16,128], index: 3, kind: output, shape index: {}]  }
   0x1   :  { %10 = vsyncpa [#allocation3 + $0x1], 0 }
   0x2   :  { %11 = vsyncpa [#allocation6], 0 }
   0x3   :  { %12 = vsyncpa [#allocation4], 0 }
   0x4   :  { %14 = vsyncpa [#allocation4 + $0x1], 0  ;;  %s1083_s12 = smov 0   ;;  %s1085_s13 = smov 0  }
   0x5   :  { %s1087_s14 = smov 0   ;;  %s1089_s15 = smov 0  }
   0x6   :  { %s1091_s16 = smov 0   ;;  %s1093_s17 = smov 0  }
   0x7 LB: > { %s681_s18 = sadd.s32 4294967295, %s1056_s17   ;;  %s682_s19 = sadd.s32 4294967294, %s1056_s17   ;;  %s1056_s17 = sphi %s1093_s17, %s20_s17   ;;  %s1052_s16 = sphi %s1091_s16, %s1257_s16   ;;  %s1048_s15 = sphi %s1089_s15, %s1256_s15   ;;  %s1044_s14 = sphi %s1087_s14, %s1255_s14   ;;  %s1040_s13 = sphi %s1085_s13, %s1254_s13   ;;  %s1036_s12 = sphi %s1083_s12, %s1253_s12  }
   0x8   : > { %p61_p0 = scmp.ne.s32.totalorder %s1040_s13, %s1036_s12  ;;  %p1117_p1 = scmp.eq.s32.totalorder %s681_s18, 0 }
   0x9   : > { %p1121_p2 = scmp.eq.s32.totalorder %s681_s18, 1  ;;  %p147_p3 = scmp.eq.s32.totalorder %s682_s19, 1 }
   0xa   : > { %p1127_p4 = por %p1117_p1, %p61_p0  ;;  %p683_p5 = scmp.ge.s32.totalorder %s1056_s17, 1 }
   0xb   : > { %p1132_p6 = por %p147_p3, %p61_p0  ;;  %p154_p7 = scmp.lt.s32.totalorder %s1056_s17, 3 }
   0xc   : > { %s167_s26 = sshll.u32 %s1244_s1, 4  ;;  %s1058_s28 = smov [#allocation5]   ;;  %s168_s26 = int_to_ptr.hbm [resolvable:$true] %s167_s26 }
   0xd   : > { %p1140_p8 = pnand %p683_p5, %p154_p7  ;;  %s169_s29 = sshll.u32 %s1058_s28, 4  ;;  %s170_s29 = int_to_ptr.vmem [resolvable:$true] %s169_s29 }
   0xe   : > { %p686_p11 = scmp.ge.s32.totalorder %s1056_s17, 2  ;;  %s1059_s30 = smov 64  }
   0xf   : > { %p840_p9 = pneg %p1140_p8  ;;  %s1060_s4 = smov 4  }
  0x10   : > { %s35_s5 = sadd.s32 1, %s1052_s16  ;;  %s48_s6 = sadd.s32 1, %s1044_s14 }
  0x11   : > { %p841_p10 = pnand %p840_p9, %p1117_p1  ;;  %p37_p12 = scmp.ge.s32.totalorder %s35_s5, 2 }
  0x12   : > { %p55_p13 = scmp.ne.s32.totalorder %s1044_s14, %s1040_s13  ;;  %p56_p0 = scmp.eq.s32.totalorder %s1056_s17, 0 }
  0x13   : > { %843 = dma.hbm_to_vmem [thread:$0]  (!%p841_p10), %s168_s26, 3072, %s170_s29, [#allocation6], %s1059_s30, %s1059_s30, %s1060_s4  }
  0x14   : > { %s1259_s5 = smov (%p37_p12, %s35_s5), 0  ;;  %p57_p3 = por %p56_p0, %p55_p13 }
  0x15   : > { %p1161_p5 = por %p1121_p2, %p55_p13  ;;  %s43_s8 = ssub.s32 %s1052_s16, %s1259_s5 }
  0x16   : > { %p853_p7 = scmp.lt.s32.totalorder %s1056_s17, 2  ;;  %p46_p9 = scmp.eq.s32.totalorder %s43_s8, 0 }
  0x17   : > { %s189_s9 = sand.u32 1, %s1044_s14   ;;  %s830_s18 = smul.u32 12, %s1052_s16 }
  0x18   : > { %s829_s10 = smul.u32 12, %s189_s9  ;;  %p845_p10 = pnand %p853_p7, %p57_p3 }
  0x19   : > { %s1170_s11 = scalar_select %p46_p9, %s1044_s14, %s48_s6  }
  0x1a   : > { %s193_s19 = scalar_lea.vmem [#allocation2], %s829_s10  ;;  %s200_s28 = scalar_lea.hbm %s1243_s0, %s830_s18 }
  0x1b   : > { %s203_s24 = sshll.u32 %s193_s19, 4  ;;  %s201_s21 = sshll.u32 %s200_s28, 4  ;;  %s204_s24 = int_to_ptr.vmem [resolvable:$true] %s203_s24  ;;  %s202_s21 = int_to_ptr.hbm [resolvable:$true] %s201_s21 }
  0x1c   : > { %s190_s29 = scalar_lea.sflag [#allocation3], %s189_s9  ;;  %215 = sbr.rel (%p1140_p8) target bundleno = 217 (0xd9), region = 32 }
  0x1d   : > { %847 = dma.hbm_to_vmem [thread:$0]  (!%p845_p10), %s202_s21, 192, %s204_s24, %s190_s29, %s1059_s30, %s1059_s30, %s1060_s4  }
  0x1e   : > { %s1182_s6 = sand.u32 (!%p1140_p8), 1, %s1040_s13  }
  0x1f   : > { %s831_s8 = smul.u32 (!%p1140_p8), 12, %s1182_s6  ;;  %s218_s10 = scalar_lea.sflag (!%p1140_p8), [#allocation3], %s1182_s6 }
  0x21   : > { %s1186_s18 = scalar_lea.vmem [#allocation2], %s831_s8 }
  0x22   : > { %1023 = dma.done.wait (%p1127_p4), %s218_s10, 192  }
  0x23   : > { %1025 = vsyncadd (%p1127_p4), %s218_s10, 4294967104 }
  0x24   : > { %1027 = dma.done.wait (%p1117_p1), [#allocation6], 3072  }
  0x25   : > { %1029 = vsyncadd (%p1117_p1), [#allocation6], 4294964224  ;;  %v804_v0 = vld [vmem:[#allocation5 + $0x38] sm:$0xff]  ;;  %v803_v3 = vld [vmem:[#allocation5 + $0x30] sm:$0xff]  ;;  %vm377_vm0 = vsmask.f32 7424 }
  0x26   : > { %v812_v1 = vld [vmem:[#allocation5 + $0x78] sm:$0xff]  ;;  %333 = vmatpush.bf16.msra.mxu0 %v804_v0  ;;  %v811_v4 = vld [vmem:[#allocation5 + $0x70] sm:$0xff]  ;;  %v802_v6 = vld [vmem:[#allocation5 + $0x28] sm:$0xff]  ;;  %vm476_vm1 = vcmask 1046528   ;;  %s690_s27 = sshll.u32 %s1182_s6, 4  ;;  %s821_s30 = sshll.u32 %s1048_s15, 4 }
  0x27   : > { %v820_v2 = vld [vmem:[#allocation5 + $0xb8] sm:$0xff]  ;;  %439 = vmatpush.bf16.msra.mxu1 %v812_v1  ;;  %v819_v5 = vld [vmem:[#allocation5 + $0xb0] sm:$0xff]  ;;  %v810_v7 = vld [vmem:[#allocation5 + $0x68] sm:$0xff]  ;;  %s562_s19 = scalar_lea.hbm %s1246_s3, %s821_s30  ;;  %s252_s24 = scalar_lea.vmem [#allocation7], %s690_s27 }
  0x28   : > { %529 = vmatpush.bf16.msra.mxu2 %v820_v2  ;;  %v818_v8 = vld [vmem:[#allocation5 + $0xa8] sm:$0xff]  ;;  %v801_v9 = vld [vmem:[#allocation5 + $0x20] sm:$0xff]  ;;  %v351_v12 = vld [vmem:[%s1186_s18 + $0x8] sm:$0x1]  ;;  %s563_s25 = sshll.u32 %s252_s24, 4  ;;  %s565_s26 = sshll.u32 %s562_s19, 4  ;;  %s564_s25 = int_to_ptr.vmem [resolvable:$true] %s563_s25  ;;  %s566_s26 = int_to_ptr.hbm [resolvable:$true] %s565_s26 }
  0x29   : > { %v809_v10 = vld [vmem:[#allocation5 + $0x60] sm:$0xff]  ;;  %v800_v13 = vld [vmem:[#allocation5 + $0x18] sm:$0xff]  ;;  %v374_v15 = vunpack.c.l.b16 %v351_v12  ;;  %v799_v18 = vld [vmem:[#allocation5 + $0x10] sm:$0xff]  ;;  %s548_s15 = scalar_lea.sflag [#allocation4], %s1182_s6  ;;  %s984_s28 = sshra.s32 %s566_s26, 4  ;;  %s985_s28 = int_to_ptr.hbm [resolvable:$true] %s984_s28 }
  0x2a   : > { %334 = vmatpush.bf16.msra.mxu0 %v803_v3  ;;  %v817_v11 = vld [vmem:[#allocation5 + $0xa0] sm:$0xff]  ;;  %v808_v14 = vld [vmem:[#allocation5 + $0x58] sm:$0xff]  ;;  %v807_v19 = vld [vmem:[#allocation5 + $0x50] sm:$0xff]  ;;  %s986_s21 = scalar_lea.hbm %s985_s28, 16  ;;  %s990_s10 = scalar_lea.hbm %s1246_s3, 32 }
  0x2b   : > { %440 = vmatpush.bf16.msra.mxu1 %v811_v4  ;;  %v816_v16 = vld [vmem:[#allocation5 + $0x98] sm:$0xff]  ;;  %v376_v20 = vpack.c.b16 %v374_v15, %v374_v15  ;;  %v815_v22 = vld [vmem:[#allocation5 + $0x90] sm:$0xff]  ;;  %v798_v25 = vld [vmem:[#allocation5 + $0x8] sm:$0xff]  ;;  %p987_p1 = scmp.ne.s32.totalorder %s985_s28, %s986_s21  ;;  %p991_p8 = scmp.lt.s32.totalorder %s985_s28, %s1246_s3 }
  0x2c   : > { %530 = vmatpush.bf16.msra.mxu2 %v819_v5  ;;  %v823_v17 = vld [vmem:[%s1186_s18] sm:$0xff]   ;;  %v797_v32 = vld [vmem:[#allocation5] sm:$0xff]  ;;  %p992_p12 = scmp.lt.s32.totalorder %s990_s10, %s986_s21 }
  0x2d   : > { %v381_v21 = vshll.u32 %v823_v17, 16  ;;  %v826_v23 = vld [vmem:[%s1186_s18] sm:$0xf0]  ;;  %v827_v24 = vld [vmem:[%s1186_s18] sm:$0xe]  ;;  %v379_v27 = vshrl.u32 %v823_v17, 16  ;;  %p988_p2 = pnand %p987_p1, %p1161_p5 }
  0x2e   : > { %335 = vmatpush.bf16.msra.mxu0 %v802_v6  ;;  %v806_v26 = vld [vmem:[#allocation5 + $0x48] sm:$0xff]  ;;  %v386_v29 = vshll.u32 %v376_v20, 16  ;;  %v828_v31 = vor.u32 %v827_v24, %v826_v23  ;;  %v805_v33 = vld [vmem:[#allocation5 + $0x40] sm:$0xff]  ;;  %v478_v38 = vrot.slane %v376_v20, 1  ;;  %p993_p13 = por %p992_p12, %p991_p8 }
  0x2f   : > { %441 = vmatpush.bf16.msra.mxu1 %v810_v7  ;;  %v383_v28 = vrot.slane %v381_v21, 1  ;;  %v814_v30 = vld [vmem:[#allocation5 + $0x88] sm:$0xff]  ;;  %v813_v36 = vld [vmem:[#allocation5 + $0x80] sm:$0xff]  ;;  %p989_p4 = pneg %p988_p2 }
  0x30   : > { %531 = vmatpush.bf16.msra.mxu2 %v818_v8  ;;  %v388_v35 = vrot.slane %v386_v29, 1  ;;  %v477_v37 = vrot.slane %v828_v31, 1  ;;  %v796_v39 = vld [vmem:[%s1186_s18] sm:$0xff] }
  0x31   : > { %v384_v34 = vor.u32 %v383_v28, %v379_v27  ;;  %v909_v42 = vld [vmem:[%s1245_s2] ss:$0 sm:$0xff]  ;;  %p994_p0 = pnand %p993_p13, %p989_p4 }
  0x32   : > { %336 = vmatpush.bf16.msra.mxu0 %v801_v9  ;;  %v479_v41 = vsel %vm476_vm1, %v477_v37, %v478_v38 }
  0x33   : > { %442 = vmatpush.bf16.msra.mxu1 %v809_v10  ;;  %v389_v40 = vsel %vm377_vm0, %v384_v34, %v388_v35 }
  0x34   : > { %532 = vmatpush.bf16.msra.mxu2 %v817_v11 }
  0x36   : > { %337 = vmatpush.bf16.msra.mxu0 %v800_v13 }
  0x37   : > { %443 = vmatpush.bf16.msra.mxu1 %v808_v14 }
  0x38   : > { %533 = vmatpush.bf16.msra.mxu2 %v816_v16 }
  0x3a   : > { %338 = vmatpush.bf16.msra.mxu0 %v799_v18 }
  0x3b   : > { %444 = vmatpush.bf16.msra.mxu1 %v807_v19 }
  0x3c   : > { %534 = vmatpush.bf16.msra.mxu2 %v815_v22 }
  0x3e   : > { %339 = vmatpush.bf16.msra.mxu0 %v798_v25 }
  0x3f   : > { %445 = vmatpush.bf16.msra.mxu1 %v806_v26 }
  0x40   : > { %535 = vmatpush.bf16.msra.mxu2 %v814_v30 }
  0x42   : > { %340 = vmatpush.bf16.msra.mxu0 %v797_v32 }
  0x43   : > { %446 = vmatpush.bf16.msra.mxu1 %v805_v33 }
  0x44   : > { %536 = vmatpush.bf16.msra.mxu2 %v813_v36 }
  0x45   : > { %341 = vmatmul.bf16.vlgmr.msra.gmra.mxu0 %v796_v39 }
  0x46   : > { %447 = vmatmul.bf16.vlgmr.msra.gmra.mxu1 %v389_v40 }
  0x47   : > { %537 = vmatmul.bf16.vlgmr.msra.gmra.mxu2 %v479_v41 }
  0xc2   : > { %v342_v43 = vpop.f32.mrf.mxu0 }
  0xc3   : > { %v347_v44 = vadd.f32 %v909_v42, %v342_v43  ;;  %v448_v45 = vpop.f32.mrf.mxu1 }
  0xc5   : > { %v453_v46 = vadd.f32 %v448_v45, %v347_v44 }
  0xca   : > { %v538_v47 = vpop.f32.mrf.mxu2  ;;  %v344_v49 = vpop.f32.mrf.mxu0 }
  0xcb   : > { %v543_v48 = vadd.f32 %v538_v47, %v453_v46  ;;  %v348_v50 = vadd.f32 %v909_v42, %v344_v49  ;;  %v450_v51 = vpop.f32.mrf.mxu1 }
  0xcd   : > { %545 = vst [vmem:[%s252_s24] sm:$0xff] %v543_v48  ;;  %v454_v52 = vadd.f32 %v450_v51, %v348_v50 }
  0xd2   : > { %v540_v53 = vpop.f32.mrf.mxu2 }
  0xd3   : > { %v544_v54 = vadd.f32 %v540_v53, %v454_v52 }
  0xd5   : > { %546 = vst [vmem:[%s252_s24 + $0x8] sm:$0xff] %v544_v54 }
  0xd6   : > { %997 = shalt.err (!%p994_p0)
}
  0xd7   : > { %s1061_s6 = smov 128   ;;  %s1062_s22 = smov 8  }
  0xd8   : > { %838 = dma.vmem_to_hbm [thread:$0]  (%p1161_p5), %s564_s25, 256, %s566_s26, %s548_s15, %s1061_s6, %s1061_s6, %s1062_s22  }
  0xd9 PF: > { %s580_s27 = sand.u32 1, %s1036_s12   ;;  %p849_p3 = pnand %p686_p11, %p1132_p6 }
  0xda   : > { %s581_s30 = scalar_lea.sflag [#allocation4], %s580_s27 }
  0xdb   : > { %p850_p7 = pneg %p849_p3 }
  0xdd   : > { %1031 = dma.done.wait (%p850_p7), %s581_s30, 256  }
  0xde   : > { %1033 = vsyncadd (%p850_p7), %s581_s30, 4294967040  ;;  %s20_s17 = sadd.s32 1, %s1056_s17   ;;  %s1253_s12 = smov %s1040_s13 }
  0xdf   : > { %p17_p9 = scmp.ge.s32.totalorder %s20_s17, 4   ;;  %s1254_s13 = smov %s1044_s14 }
  0xe0   : > { %s1255_s14 = smov %s1170_s11  ;;  %s1256_s15 = smov %s1052_s16 }
  0xe1   : > { %s1257_s16 = smov %s1259_s5  ;;  %19 = sbr.rel (!%p17_p9) target bundleno = 7 (0x7), region = 87 }
  0xe6   :  { %587 = vsyncpa [#allocation3], 1 }
  0xe7   :  { %589 = vsyncpa [#allocation3 + $0x1], 1 }
  0xe8   :  { %590 = vsyncpa [#allocation6], 1 }
  0xe9   :  { %591 = vsyncpa [#allocation4], 1 }
  0xea   :  { %593 = vsyncpa [#allocation4 + $0x1], 1 }

</bundles_post_ra>
